<compile_context>
chip_gen: v7x
topology: tpu7x:2x2x1
jax: 0.10.0
libtpu: 0.0.40
codegen_flags: <defaults>
</compile_context>

<pallas_src>
import jax
import jax.numpy as jnp
from jax import lax
from jax.experimental import pallas as pl
from jax.experimental.pallas import tpu as pltpu

HIDDEN = 64
OUT_DIM = 2
DROPOUT_P = 0.3                                   # torch.nn.Dropout(0.3)
KEEP_SCALE = 1.0 / (1.0 - DROPOUT_P)              # folded into w2 / w3 in the wrapper
MASK_BITS = 15                                    # hash bits used per dropout layer
DROP_THRESH = int(round(DROPOUT_P * (1 << MASK_BITS)))   # drop iff draw < thresh
TILE_B_MAX = 4096                                 # fits VMEM with margin on v5e/v6e/v7x


def _hash32(x):
    # Cheap int32 scrambler (xor-shift-multiply). Wrapping int32 arithmetic is
    # intended; uses only VPU-friendly ops (mul/xor/shift), no uint32, no converts.
    x = (x ^ (x >> 16)) * 0x45D9F3B
    x = (x ^ (x >> 16)) * 0x45D9F3B
    x = x ^ (x >> 16)
    return x


def fnn_dropout_kernel(seed_ref, xt_ref, w1_ref, b1_ref, w2_ref, b2_ref,
                       w3_ref, b3_ref, ot_ref):
    tile_b = xt_ref.shape[1]

    # ---- dropout keep-masks --------------------------------------------------
    # One (HIDDEN, tile_b) int32 hash per tile; the two 64-wide dropout layers use
    # disjoint 15-bit fields of the same draw (half the VALU work of a
    # (2*HIDDEN, tile_b) draw, same keep distribution). Counters are globally
    # unique per (hidden unit, batch element), seed/program_id-dependent.
    row = lax.broadcasted_iota(jnp.int32, (HIDDEN, tile_b), 0)
    col = lax.broadcasted_iota(jnp.int32, (HIDDEN, tile_b), 1)
    gcol = col + pl.program_id(0) * tile_b            # global batch index
    ctr = gcol * HIDDEN + row
    bits = _hash32(ctr ^ (seed_ref[0] * 0x27D4EB2D))
    keep1 = (bits & 0x7FFF) >= DROP_THRESH            # P(keep) = 0.7, pure int compare
    keep2 = ((bits >> MASK_BITS) & 0x7FFF) >= DROP_THRESH

    # ---- fused MLP (batch on the lane axis; every matmul is W @ x_t) ---------
    x = xt_ref[...].astype(jnp.bfloat16)              # f32 -> bf16 on the VPU, under DMA

    h1 = jnp.dot(w1_ref[...], x, preferred_element_type=jnp.float32) + b1_ref[...]
    h1 = jnp.maximum(h1, 0.0)
    h1 = jnp.where(keep1, h1, 0.0)                    # 1/keep scale folded into w2

    h2 = jnp.dot(w2_ref[...], h1.astype(jnp.bfloat16),
                 preferred_element_type=jnp.float32) + b2_ref[...]
    h2 = jnp.maximum(h2, 0.0)
    h2 = jnp.where(keep2, h2, 0.0)                    # 1/keep scale folded into w3

    logits = jnp.dot(w3_ref[...], h2.astype(jnp.bfloat16),
                     preferred_element_type=jnp.float32) + b3_ref[...]
    # Explicit sigmoid: exp goes to the EUP; avoids relying on a logistic
    # lowering in the interpreter. Elementwise math stays f32 (safe on v5e).
    ot_ref[...] = (1.0 / (1.0 + jnp.exp(-logits))).astype(ot_ref.dtype)


def _round_up(v, m):
    return ((v + m - 1) // m) * m


def fnn_dropout_forward(x, params, seed):
    """x: (B, F) float32.  params use the torch-native (out, in) weight layout:
    w1 (64, F), b1 (64, 1), w2 (64, 64), b2 (64, 1), w3 (2, 64), b3 (2, 1)."""
    w1, b1, w2, b2, w3, b3 = params
    B, F = x.shape

    # Batch on the lane axis -> lane-dense x tiles, h1/h2 intermediates and
    # full-width output stores.
    # TODO(synk): this transpose is wrapper-side layout plumbing; ideally the
    # upstream producer emits x already as (F, B) (and in bf16).
    xt = x.T                                          # (F, B) f32; bf16 cast happens in-kernel

    # Fold the inverted-dropout scale (1/0.7) into the *next* layer's weights:
    # it commutes with ReLU (positive scale) and the following matmul.
    w1b = w1.astype(jnp.bfloat16)
    w2b = (w2 * KEEP_SCALE).astype(jnp.bfloat16)
    w3b = (w3 * KEEP_SCALE).astype(jnp.bfloat16)

    # Tile selection: full batch when tiny; otherwise >=2 grid steps so the
    # "parallel" batch axis can shard across both v7x TensorCores; capped at
    # TILE_B_MAX so the tile fits VMEM comfortably on every generation.
    if B <= 128:
        tile_b = B                                    # full-dim block (no 128-multiple needed)
    elif B <= 2 * TILE_B_MAX:
        tile_b = _round_up(pl.cdiv(B, 2), 128)
    else:
        tile_b = TILE_B_MAX
    grid = (pl.cdiv(B, tile_b),)

    seed_arr = jnp.asarray([seed], dtype=jnp.int32)
    const = lambda i: (0, 0)        # weights/biases: VMEM-resident across the grid

    out_t = pl.pallas_call(
        fnn_dropout_kernel,
        out_shape=jax.ShapeDtypeStruct((OUT_DIM, B), jnp.float32),
        grid=grid,
        in_specs=[
            pl.BlockSpec(memory_space=pltpu.MemorySpace.SMEM),   # seed scalar
            pl.BlockSpec((F, tile_b), lambda i: (0, i)),         # x^T tile (lane-dense)
            pl.BlockSpec((HIDDEN, F), const),                    # w1 (out, in)
            pl.BlockSpec((HIDDEN, 1), const),                    # b1
            pl.BlockSpec((HIDDEN, HIDDEN), const),               # w2 * 1/keep
            pl.BlockSpec((HIDDEN, 1), const),                    # b2
            pl.BlockSpec((OUT_DIM, HIDDEN), const),              # w3 * 1/keep
            pl.BlockSpec((OUT_DIM, 1), const),                   # b3
        ],
        out_specs=pl.BlockSpec((OUT_DIM, tile_b), lambda i: (0, i)),
        compiler_params=pltpu.CompilerParams(
            dimension_semantics=("parallel",),        # megacore sharding on v7x
            vmem_limit_bytes=48 * 1024 * 1024,        # > v5e's 16 MiB default, < v7x's 64 MiB
        ),
    )(seed_arr, xt, w1b, b1, w2b, b2, w3b, b3)

    return out_t.T                                    # (B, OUT_DIM)


def init_params(input_feature_size, key):
    """Deterministic synthetic init matching torch.nn.Linear shapes:
    weights stored (out, in) like torch, biases stored as (out, 1) columns."""
    k1, k2, k3 = jax.random.split(key, 3)

    def lin(k, fan_in, fan_out):
        bound = 1.0 / float(fan_in) ** 0.5
        kw, kb = jax.random.split(k)
        w = jax.random.uniform(kw, (fan_out, fan_in), jnp.float32, -bound, bound)
        b = jax.random.uniform(kb, (fan_out, 1), jnp.float32, -bound, bound)
        return w, b

    w1, b1 = lin(k1, input_feature_size, HIDDEN)
    w2, b2 = lin(k2, HIDDEN, HIDDEN)
    w3, b3 = lin(k3, HIDDEN, OUT_DIM)
    return (w1, b1, w2, b2, w3, b3)


if __name__ == "__main__":
    key = jax.random.PRNGKey(0)
    kx, kp = jax.random.split(key)

    batch = 8
    input_feature_size = 32
    x = jax.random.normal(kx, (batch, input_feature_size), dtype=jnp.float32)
    params = init_params(input_feature_size, kp)

    out = fnn_dropout_forward(x, params, seed=0)
    out = jax.block_until_ready(out)

    assert out.shape == (batch, OUT_DIM)
    assert bool(jnp.all(jnp.isfinite(out)))
    assert bool(jnp.all((out >= 0.0) & (out <= 1.0)))   # sigmoid range
    print("KERNEL_OK")
</pallas_src>

<mosaic_0001>
module attributes {stable_mosaic.version = 11 : i64} {
  func.func @fnn_dropout_kernel(%arg0: i32, %arg1: memref<1xi32, #tpu.memory_space<smem>>, %arg2: memref<32x8xf32, #tpu.memory_space<vmem>>, %arg3: memref<64x32xbf16, #tpu.memory_space<vmem>>, %arg4: memref<64x1xf32, #tpu.memory_space<vmem>>, %arg5: memref<64x64xbf16, #tpu.memory_space<vmem>>, %arg6: memref<64x1xf32, #tpu.memory_space<vmem>>, %arg7: memref<2x64xbf16, #tpu.memory_space<vmem>>, %arg8: memref<2x1xf32, #tpu.memory_space<vmem>>, %arg9: memref<2x8xf32, #tpu.memory_space<vmem>>) attributes {dimension_semantics = [#tpu.dimension_semantics<parallel>], iteration_bounds = array<i64: 1>, scalar_prefetch = 0 : i64, scratch_operands = 0 : i64, tpu.core_type = #tpu.core_type<tc>, window_params = [{transform_indices = @transform_0, window_bounds = array<i64: 1>}, {transform_indices = @transform_1, window_bounds = array<i64: 32, 8>}, {pipeline_mode = #tpu.pipeline_mode<synchronous>, transform_indices = @transform_2, window_bounds = array<i64: 64, 32>}, {pipeline_mode = #tpu.pipeline_mode<synchronous>, transform_indices = @transform_3, window_bounds = array<i64: 64, 1>}, {pipeline_mode = #tpu.pipeline_mode<synchronous>, transform_indices = @transform_4, window_bounds = array<i64: 64, 64>}, {pipeline_mode = #tpu.pipeline_mode<synchronous>, transform_indices = @transform_5, window_bounds = array<i64: 64, 1>}, {pipeline_mode = #tpu.pipeline_mode<synchronous>, transform_indices = @transform_6, window_bounds = array<i64: 2, 64>}, {pipeline_mode = #tpu.pipeline_mode<synchronous>, transform_indices = @transform_7, window_bounds = array<i64: 2, 1>}, {transform_indices = @transform_8, window_bounds = array<i64: 2, 8>}]} {
    %0 = tpu.iota {dimensions = array<i32: 0>} : vector<64x8xi32>
    %1 = tpu.iota {dimensions = array<i32: 1>} : vector<64x8xi32>
    %c8_i32 = arith.constant 8 : i32
    %2 = arith.muli %arg0, %c8_i32 : i32
    %3 = vector.broadcast %2 : i32 to vector<64x8xi32>
    %4 = arith.addi %1, %3 : vector<64x8xi32>
    %c64_i32 = arith.constant 64 : i32
    %5 = vector.broadcast %c64_i32 : i32 to vector<64x8xi32>
    %6 = arith.muli %4, %5 : vector<64x8xi32>
    %7 = arith.addi %6, %0 : vector<64x8xi32>
    %c0 = arith.constant 0 : index
    %8 = memref.load %arg1[%c0] : memref<1xi32, #tpu.memory_space<smem>>
    %c668265261_i32 = arith.constant 668265261 : i32
    %9 = arith.muli %8, %c668265261_i32 : i32
    %10 = vector.broadcast %9 : i32 to vector<64x8xi32>
    %11 = arith.xori %7, %10 : vector<64x8xi32>
    %c16_i32 = arith.constant 16 : i32
    %12 = vector.broadcast %c16_i32 : i32 to vector<64x8xi32>
    %13 = arith.shrsi %11, %12 : vector<64x8xi32>
    %14 = arith.xori %11, %13 : vector<64x8xi32>
    %c73244475_i32 = arith.constant 73244475 : i32
    %15 = vector.broadcast %c73244475_i32 : i32 to vector<64x8xi32>
    %16 = arith.muli %14, %15 : vector<64x8xi32>
    %c16_i32_0 = arith.constant 16 : i32
    %17 = vector.broadcast %c16_i32_0 : i32 to vector<64x8xi32>
    %18 = arith.shrsi %16, %17 : vector<64x8xi32>
    %19 = arith.xori %16, %18 : vector<64x8xi32>
    %c73244475_i32_1 = arith.constant 73244475 : i32
    %20 = vector.broadcast %c73244475_i32_1 : i32 to vector<64x8xi32>
    %21 = arith.muli %19, %20 : vector<64x8xi32>
    %c16_i32_2 = arith.constant 16 : i32
    %22 = vector.broadcast %c16_i32_2 : i32 to vector<64x8xi32>
    %23 = arith.shrsi %21, %22 : vector<64x8xi32>
    %24 = arith.xori %21, %23 : vector<64x8xi32>
    %c32767_i32 = arith.constant 32767 : i32
    %25 = vector.broadcast %c32767_i32 : i32 to vector<64x8xi32>
    %26 = arith.andi %24, %25 : vector<64x8xi32>
    %c9830_i32 = arith.constant 9830 : i32
    %27 = vector.broadcast %c9830_i32 : i32 to vector<64x8xi32>
    %28 = arith.cmpi sge, %26, %27 : vector<64x8xi32>
    %c15_i32 = arith.constant 15 : i32
    %29 = vector.broadcast %c15_i32 : i32 to vector<64x8xi32>
    %30 = arith.shrsi %24, %29 : vector<64x8xi32>
    %c32767_i32_3 = arith.constant 32767 : i32
    %31 = vector.broadcast %c32767_i32_3 : i32 to vector<64x8xi32>
    %32 = arith.andi %30, %31 : vector<64x8xi32>
    %c9830_i32_4 = arith.constant 9830 : i32
    %33 = vector.broadcast %c9830_i32_4 : i32 to vector<64x8xi32>
    %34 = arith.cmpi sge, %32, %33 : vector<64x8xi32>
    %c0_5 = arith.constant 0 : index
    %c0_6 = arith.constant 0 : index
    %35 = vector.load %arg2[%c0_5, %c0_6] : memref<32x8xf32, #tpu.memory_space<vmem>>, vector<32x8xf32>
    %36 = arith.truncf %35 : vector<32x8xf32> to vector<32x8xbf16>
    %c0_7 = arith.constant 0 : index
    %c0_8 = arith.constant 0 : index
    %37 = vector.load %arg3[%c0_7, %c0_8] : memref<64x32xbf16, #tpu.memory_space<vmem>>, vector<64x32xbf16>
    %cst = arith.constant dense<0.000000e+00> : vector<64x8xf32>
    %38 = tpu.matmul %37, %36, %cst {dimension_numbers = #tpu.dot_dimension_numbers<[1], [0], [0], [1], [0, 0, 1, 1], [], []>} : vector<64x32xbf16>, vector<32x8xbf16>, vector<64x8xf32> -> vector<64x8xf32>
    %c0_9 = arith.constant 0 : index
    %c0_10 = arith.constant 0 : index
    %39 = vector.load %arg4[%c0_9, %c0_10] : memref<64x1xf32, #tpu.memory_space<vmem>>, vector<64x1xf32>
    %40 = vector.broadcast %39 : vector<64x1xf32> to vector<64x8xf32>
    %41 = arith.addf %38, %40 : vector<64x8xf32>
    %cst_11 = arith.constant 0.000000e+00 : f32
    %42 = vector.broadcast %cst_11 : f32 to vector<64x8xf32>
    %43 = arith.maximumf %41, %42 : vector<64x8xf32>
    %cst_12 = arith.constant 0.000000e+00 : f32
    %44 = vector.broadcast %cst_12 : f32 to vector<64x8xf32>
    %45 = arith.select %28, %43, %44 : vector<64x8xi1>, vector<64x8xf32>
    %c0_13 = arith.constant 0 : index
    %c0_14 = arith.constant 0 : index
    %46 = vector.load %arg5[%c0_13, %c0_14] : memref<64x64xbf16, #tpu.memory_space<vmem>>, vector<64x64xbf16>
    %47 = arith.truncf %45 : vector<64x8xf32> to vector<64x8xbf16>
    %cst_15 = arith.constant dense<0.000000e+00> : vector<64x8xf32>
    %48 = tpu.matmul %46, %47, %cst_15 {dimension_numbers = #tpu.dot_dimension_numbers<[1], [0], [0], [1], [0, 0, 1, 1], [], []>} : vector<64x64xbf16>, vector<64x8xbf16>, vector<64x8xf32> -> vector<64x8xf32>
    %c0_16 = arith.constant 0 : index
    %c0_17 = arith.constant 0 : index
    %49 = vector.load %arg6[%c0_16, %c0_17] : memref<64x1xf32, #tpu.memory_space<vmem>>, vector<64x1xf32>
    %50 = vector.broadcast %49 : vector<64x1xf32> to vector<64x8xf32>
    %51 = arith.addf %48, %50 : vector<64x8xf32>
    %cst_18 = arith.constant 0.000000e+00 : f32
    %52 = vector.broadcast %cst_18 : f32 to vector<64x8xf32>
    %53 = arith.maximumf %51, %52 : vector<64x8xf32>
    %cst_19 = arith.constant 0.000000e+00 : f32
    %54 = vector.broadcast %cst_19 : f32 to vector<64x8xf32>
    %55 = arith.select %34, %53, %54 : vector<64x8xi1>, vector<64x8xf32>
    %c0_20 = arith.constant 0 : index
    %c0_21 = arith.constant 0 : index
    %56 = vector.load %arg7[%c0_20, %c0_21] : memref<2x64xbf16, #tpu.memory_space<vmem>>, vector<2x64xbf16>
    %57 = arith.truncf %55 : vector<64x8xf32> to vector<64x8xbf16>
    %cst_22 = arith.constant dense<0.000000e+00> : vector<2x8xf32>
    %58 = tpu.matmul %56, %57, %cst_22 {dimension_numbers = #tpu.dot_dimension_numbers<[1], [0], [0], [1], [0, 0, 1, 1], [], []>} : vector<2x64xbf16>, vector<64x8xbf16>, vector<2x8xf32> -> vector<2x8xf32>
    %c0_23 = arith.constant 0 : index
    %c0_24 = arith.constant 0 : index
    %59 = vector.load %arg8[%c0_23, %c0_24] : memref<2x1xf32, #tpu.memory_space<vmem>>, vector<2x1xf32>
    %60 = vector.broadcast %59 : vector<2x1xf32> to vector<2x8xf32>
    %61 = arith.addf %58, %60 : vector<2x8xf32>
    %cst_25 = arith.constant 0.000000e+00 : f32
    %62 = vector.broadcast %cst_25 : f32 to vector<2x8xf32>
    %63 = arith.subf %62, %61 : vector<2x8xf32>
    %64 = math.exp %63 : vector<2x8xf32>
    %cst_26 = arith.constant 1.000000e+00 : f32
    %65 = vector.broadcast %cst_26 : f32 to vector<2x8xf32>
    %66 = arith.addf %65, %64 : vector<2x8xf32>
    %cst_27 = arith.constant 1.000000e+00 : f32
    %67 = vector.broadcast %cst_27 : f32 to vector<2x8xf32>
    %68 = arith.divf %67, %66 : vector<2x8xf32>
    %c0_28 = arith.constant 0 : index
    %c0_29 = arith.constant 0 : index
    %69 = vector.load %arg9[%c0_28, %c0_29] : memref<2x8xf32, #tpu.memory_space<vmem>>, vector<2x8xf32>
    tpu.vector_store %arg9[%c0_28, %c0_29], %68 {strides = array<i32>} : memref<2x8xf32, #tpu.memory_space<vmem>>, vector<2x8xf32>,
    return
  }
  func.func @transform_0(%arg0: i32) -> i32 {
    %c0_i32 = arith.constant 0 : i32
    %c0_i32_0 = arith.constant 0 : i32
    return %c0_i32 : i32
  }
  func.func @transform_1(%arg0: i32) -> (i32, i32) {
    %c0_i32 = arith.constant 0 : i32
    %c0_i32_0 = arith.constant 0 : i32
    return %c0_i32, %arg0 : i32, i32
  }
  func.func @transform_2(%arg0: i32) -> (i32, i32) {
    %c0_i32 = arith.constant 0 : i32
    %c0_i32_0 = arith.constant 0 : i32
    %c0_i32_1 = arith.constant 0 : i32
    return %c0_i32, %c0_i32_0 : i32, i32
  }
  func.func @transform_3(%arg0: i32) -> (i32, i32) {
    %c0_i32 = arith.constant 0 : i32
    %c0_i32_0 = arith.constant 0 : i32
    %c0_i32_1 = arith.constant 0 : i32
    return %c0_i32, %c0_i32_0 : i32, i32
  }
  func.func @transform_4(%arg0: i32) -> (i32, i32) {
    %c0_i32 = arith.constant 0 : i32
    %c0_i32_0 = arith.constant 0 : i32
    %c0_i32_1 = arith.constant 0 : i32
    return %c0_i32, %c0_i32_0 : i32, i32
  }
  func.func @transform_5(%arg0: i32) -> (i32, i32) {
    %c0_i32 = arith.constant 0 : i32
    %c0_i32_0 = arith.constant 0 : i32
    %c0_i32_1 = arith.constant 0 : i32
    return %c0_i32, %c0_i32_0 : i32, i32
  }
  func.func @transform_6(%arg0: i32) -> (i32, i32) {
    %c0_i32 = arith.constant 0 : i32
    %c0_i32_0 = arith.constant 0 : i32
    %c0_i32_1 = arith.constant 0 : i32
    return %c0_i32, %c0_i32_0 : i32, i32
  }
  func.func @transform_7(%arg0: i32) -> (i32, i32) {
    %c0_i32 = arith.constant 0 : i32
    %c0_i32_0 = arith.constant 0 : i32
    %c0_i32_1 = arith.constant 0 : i32
    return %c0_i32, %c0_i32_0 : i32, i32
  }
  func.func @transform_8(%arg0: i32) -> (i32, i32) {
    %c0_i32 = arith.constant 0 : i32
    %c0_i32_0 = arith.constant 0 : i32
    return %c0_i32, %arg0 : i32, i32
  }
}

</mosaic_0001>

<bundles_post_ra>
// kernel: tpu_custom_call.1
= control target key start
LH: loop header
LB: loop body
LE: loop exit
PB: predicated region body
PF: predicated region fallthrough
CT: control target
= control target key end

     0   :  { %vm252_vm0 = vcmask 261120   ;;  %v738_v5 = vmov 0   ;;  %s990_s0 = inlined_call_operand.<no memory space> [shape: s32[1], index: 0, kind: input, shape index: {}]   ;;  %s991_s1 = inlined_call_operand.vmem [shape: f32[32,8], index: 1, kind: input, shape index: {}]   ;;  %s992_s2 = inlined_call_operand.vmem [shape: bf16[64,32], index: 2, kind: input, shape index: {}]   ;;  %s993_s3 = inlined_call_operand.vmem [shape: f32[64,1], index: 3, kind: input, shape index: {}]   ;;  %s994_s4 = inlined_call_operand.vmem [shape: bf16[64,64], index: 4, kind: input, shape index: {}]   ;;  %s995_s5 = inlined_call_operand.vmem [shape: f32[64,1], index: 5, kind: input, shape index: {}]   ;;  %s996_s6 = inlined_call_operand.vmem [shape: bf16[2,64], index: 6, kind: input, shape index: {}]   ;;  %s997_s7 = inlined_call_operand.vmem [shape: f32[2,1], index: 7, kind: input, shape index: {}]   ;;  %s998_s8 = inlined_call_operand.hbm [shape: f32[2,8], index: 8, kind: output, shape index: {}]  }
   0x1   :  { %v170_v0 = vld [vmem:[%s991_s1] sm:$0xff]  ;;  %v171_v1 = vld [vmem:[%s991_s1 + $0x8] sm:$0xff]  ;;  %v172_v2 = vld [vmem:[%s991_s1 + $0x10] sm:$0xff]  ;;  %700 = vset.pattern.permute.xlu0 %v738_v5  ;;  %701 = vset.pattern.permute.xlu1 %v738_v5 }
   0x2   :  { %v174_v3 = vpack.c.bf16 %v171_v1, %v170_v0  ;;  %v173_v4 = vld [vmem:[%s991_s1 + $0x18] sm:$0xff]  ;;  %v702_v7 = vld [vmem:[%s992_s2] sm:$0xff]   ;;  %v186_v9 = vld [vmem:[%s993_s3 + $0x10] sm:$0xff] }
   0x3   :  { %v175_v6 = vpack.c.bf16 %v173_v4, %v172_v2  ;;  %660 = vmatprep.mubr.msk.bf16.mxu0 %vm252_vm0, %v702_v7  ;;  %v184_v8 = vld [vmem:[%s993_s3] sm:$0xff]  ;;  %v703_v10 = vld [vmem:[%s992_s2 + $0x8] sm:$0xff]   ;;  %204 = vperm.xlu1 %701, %v186_v9   ;;  %v704_v12 = vld [vmem:[%s992_s2 + $0x10] sm:$0xff]  }
   0x4   :  { %656 = vmatprep.subr.bf16.mxu0 %v174_v3  ;;  %194 = vperm.xlu0 %700, %v184_v8   ;;  %v185_v11 = vld [vmem:[%s993_s3 + $0x8] sm:$0xff]  ;;  %v187_v13 = vld [vmem:[%s993_s3 + $0x18] sm:$0xff]  ;;  %v188_v14 = vld [vmem:[%s993_s3 + $0x20] sm:$0xff] }
   0x5   :  { %657 = vmatpush3.bf16.msra.mxu0 %v174_v3  ;;  %v189_v15 = vld [vmem:[%s993_s3 + $0x28] sm:$0xff] }
   0x6   :  { %658 = vmatprep.subr.bf16.mxu0 %v175_v6 }
   0x7   :  { %209 = vperm.xlu1 %701, %v187_v13  }
   0x8   :  { %199 = vperm.xlu0 %700, %v185_v11  }
   0x9   :  { %659 = vmatpush3.bf16.msra.mxu0 %v175_v6 }
   0xc   :  { %661 = vmatmul.mubr.msk.bf16.vlgmr.msra.gmra.mrb[0].mxu0 %vm252_vm0, %v703_v10 }
   0xd   :  { %664 = vmatprep.mubr.msk.bf16.mxu0 %vm252_vm0, %v704_v12 }
   0xe   :  { %14 = vsyncpa [#allocation4], 0  ;;  %214 = vperm.xlu0 %700, %v188_v14   ;;  %v705_v16 = vld [vmem:[%s992_s2 + $0x18] sm:$0xff]   ;;  %v190_v17 = vld [vmem:[%s993_s3 + $0x30] sm:$0xff]  ;;  %219 = vperm.xlu1 %701, %v189_v15   ;;  %vm426_vm1 = vcmask 523264   ;;  %v32_v29 = vlaneseq  ;;  %s741_s16 = smov [#allocation3]  }
   0xf   :  { %v191_v18 = vld [vmem:[%s993_s3 + $0x38] sm:$0xff]  ;;  %v358_v19 = vld [vmem:[%s995_s5] sm:$0xff]  ;;  %v359_v20 = vld [vmem:[%s995_s5 + $0x8] sm:$0xff]  ;;  %s56_s10 = smul.u32 668265261, %s990_s0  ;;  %s588_s1 = sshll.u32 %s741_s16, 4  ;;  %s589_s1 = int_to_ptr.vmem [resolvable:$true] %s588_s1 }
  0x10   :  { %v360_v21 = vld [vmem:[%s995_s5 + $0x10] sm:$0xff]  ;;  %v361_v22 = vld [vmem:[%s995_s5 + $0x18] sm:$0xff]  ;;  %v362_v23 = vld [vmem:[%s995_s5 + $0x20] sm:$0xff]  ;;  %v42_v30 = vand.u32 127, %v32_v29  ;;  %v33_v31 = vshrl.u32 %v32_v29, 7  ;;  %p719_p1 = scmp.lt.s32.totalorder %s589_s1, %s589_s1 }
  0x11   :  { %v363_v24 = vld [vmem:[%s995_s5 + $0x28] sm:$0xff]  ;;  %v364_v25 = vld [vmem:[%s995_s5 + $0x30] sm:$0xff]  ;;  %v365_v26 = vld [vmem:[%s995_s5 + $0x38] sm:$0xff]  ;;  %v57_v38 = vstv %s56_s10 }
  0x12   :  { %224 = vperm.xlu0 %700, %v190_v17   ;;  %229 = vperm.xlu1 %701, %v191_v18   ;;  %v525_v27 = vld [vmem:[%s997_s7] sm:$0x3]  ;;  %v46_v32 = vmul.u32 64, %v42_v30  ;;  %v34_v33 = vadd.s32 8, %v33_v31  ;;  %v35_v34 = vadd.s32 16, %v33_v31  ;;  %v36_v35 = vadd.s32 24, %v33_v31 }
  0x13   :  { %v706_v28 = vld [vmem:[%s994_s4] sm:$0xff]   ;;  %v37_v43 = vadd.s32 32, %v33_v31  ;;  %v38_v44 = vadd.s32 40, %v33_v31  ;;  %v39_v47 = vadd.s32 48, %v33_v31  ;;  %v40_v48 = vadd.s32 56, %v33_v31 }
  0x14   :  { %665 = vmatmul.mubr.msk.bf16.gmra.mrb[4].mxu0 %vm252_vm0, %v705_v16  ;;  %676 = vmatprep.mubr.msk.bf16.mxu1 %vm426_vm1, %v706_v28  ;;  %v47_v36 = vadd.s32 %v46_v32, %v33_v31  ;;  %v48_v37 = vadd.s32 %v46_v32, %v34_v33  ;;  %v49_v39 = vadd.s32 %v46_v32, %v35_v34 }
  0x15   :  { %v50_v40 = vadd.s32 %v46_v32, %v36_v35  ;;  %v51_v51 = vadd.s32 %v46_v32, %v37_v43  ;;  %v52_v52 = vadd.s32 %v46_v32, %v38_v44  ;;  %v53_v55 = vadd.s32 %v46_v32, %v39_v47 }
  0x16   :  { %368 = vperm.xlu0 %700, %v358_v19   ;;  %373 = vperm.xlu1 %701, %v359_v20   ;;  %v58_v41 = vxor.u32 %v57_v38, %v47_v36  ;;  %v59_v42 = vxor.u32 %v57_v38, %v48_v37  ;;  %v60_v45 = vxor.u32 %v57_v38, %v49_v39 }
  0x17   :  { %v61_v46 = vxor.u32 %v57_v38, %v50_v40  ;;  %v54_v56 = vadd.s32 %v46_v32, %v40_v48  ;;  %v62_v59 = vxor.u32 %v57_v38, %v51_v51  ;;  %v63_v60 = vxor.u32 %v57_v38, %v52_v52 }
  0x18   :  { %v66_v49 = vshra.s32 %v58_v41, 16  ;;  %v67_v50 = vshra.s32 %v59_v42, 16  ;;  %v68_v53 = vshra.s32 %v60_v45, 16  ;;  %v64_v63 = vxor.u32 %v57_v38, %v53_v55 }
  0x19   :  { %v69_v54 = vshra.s32 %v61_v46, 16  ;;  %v65_v0 = vxor.u32 %v57_v38, %v54_v56  ;;  %v70_v3 = vshra.s32 %v62_v59, 16  ;;  %v71_v4 = vshra.s32 %v63_v60, 16 }
  0x1a   :  { %378 = vperm.xlu0 %700, %v360_v21   ;;  %383 = vperm.xlu1 %701, %v361_v22   ;;  %v74_v57 = vxor.u32 %v66_v49, %v58_v41  ;;  %v75_v58 = vxor.u32 %v67_v50, %v59_v42  ;;  %v76_v61 = vxor.u32 %v68_v53, %v60_v45  ;;  %v72_v7 = vshra.s32 %v64_v63, 16 }
  0x1b   :  { %v77_v62 = vxor.u32 %v69_v54, %v61_v46  ;;  %v73_v8 = vshra.s32 %v65_v0, 16  ;;  %v78_v11 = vxor.u32 %v70_v3, %v62_v59  ;;  %v79_v12 = vxor.u32 %v71_v4, %v63_v60 }
  0x1c   :  { %v82_v1 = vmul.u32 73244475, %v74_v57  ;;  %v83_v2 = vmul.u32 73244475, %v75_v58  ;;  %v80_v15 = vxor.u32 %v72_v7, %v64_v63 }
  0x1d   :  { %v84_v5 = vmul.u32 73244475, %v76_v61  ;;  %v85_v6 = vmul.u32 73244475, %v77_v62  ;;  %v81_v16 = vxor.u32 %v73_v8, %v65_v0 }
  0x1e   :  { %388 = vperm.xlu0 %700, %v362_v23   ;;  %393 = vperm.xlu1 %701, %v363_v24   ;;  %v90_v9 = vshra.s32 %v82_v1, 16  ;;  %v91_v10 = vshra.s32 %v83_v2, 16  ;;  %v86_v19 = vmul.u32 73244475, %v78_v11  ;;  %v87_v20 = vmul.u32 73244475, %v79_v12 }
  0x1f   :  { %v92_v13 = vshra.s32 %v84_v5, 16  ;;  %v93_v14 = vshra.s32 %v85_v6, 16  ;;  %v88_v23 = vmul.u32 73244475, %v80_v15  ;;  %v89_v24 = vmul.u32 73244475, %v81_v16 }
  0x20   :  { %v98_v17 = vxor.u32 %v90_v9, %v82_v1  ;;  %v99_v18 = vxor.u32 %v91_v10, %v83_v2  ;;  %v95_v28 = vshra.s32 %v87_v20, 16 }
  0x21   :  { %v100_v21 = vxor.u32 %v92_v13, %v84_v5  ;;  %v101_v22 = vxor.u32 %v93_v14, %v85_v6  ;;  %v96_v32 = vshra.s32 %v88_v23, 16  ;;  %v97_v33 = vshra.s32 %v89_v24, 16 }
  0x22   :  { %398 = vperm.xlu0 %700, %v364_v25   ;;  %403 = vperm.xlu1 %701, %v365_v26   ;;  %v106_v25 = vmul.u32 73244475, %v98_v17  ;;  %v107_v26 = vmul.u32 73244475, %v99_v18  ;;  %v103_v38 = vxor.u32 %v95_v28, %v87_v20 }
  0x23   :  { %v108_v29 = vmul.u32 73244475, %v100_v21  ;;  %v109_v30 = vmul.u32 73244475, %v101_v22  ;;  %v104_v41 = vxor.u32 %v96_v32, %v88_v23  ;;  %v105_v42 = vxor.u32 %v97_v33, %v89_v24 }
  0x24   :  { %v114_v34 = vshra.s32 %v106_v25, 16  ;;  %v115_v36 = vshra.s32 %v107_v26, 16  ;;  %v111_v47 = vmul.u32 73244475, %v103_v38 }
  0x25   :  { %v116_v39 = vshra.s32 %v108_v29, 16  ;;  %v117_v40 = vshra.s32 %v109_v30, 16  ;;  %v112_v51 = vmul.u32 73244475, %v104_v41  ;;  %v113_v52 = vmul.u32 73244475, %v105_v42 }
  0x26   :  { %528 = vperm.xlu0 %700, %v525_v27   ;;  %v94_v27 = vshra.s32 %v86_v19, 16  ;;  %v873_v43 = vxor.u32 %v114_v34, %v106_v25  ;;  %v875_v45 = vxor.u32 %v115_v36, %v107_v26  ;;  %v119_v57 = vshra.s32 %v111_v47, 16  ;;  %v707_v41 = vld [vmem:[%s994_s4 + $0x8] sm:$0xff]   ;;  %v708_v42 = vld [vmem:[%s994_s4 + $0x10] sm:$0xff]  }
  0x27   :  { %v877_v48 = vxor.u32 %v116_v39, %v108_v29  ;;  %v879_v49 = vxor.u32 %v117_v40, %v109_v30  ;;  %v120_v1 = vshra.s32 %v112_v51, 16  ;;  %v121_v2 = vshra.s32 %v113_v52, 16 }
  0x28   :  { %v102_v37 = vxor.u32 %v94_v27, %v86_v19  ;;  %v130_v53 = vand.u32 32767, %v873_v43  ;;  %v131_v55 = vand.u32 32767, %v875_v45  ;;  %v895_v10 = vxor.u32 %v119_v57, %v111_v47 }
  0x29   :  { %v132_v60 = vand.u32 32767, %v877_v48  ;;  %v133_v61 = vand.u32 32767, %v879_v49  ;;  %v905_v17 = vxor.u32 %v120_v1, %v112_v51  ;;  %v907_v18 = vxor.u32 %v121_v2, %v113_v52 }
  0x2a   :  { %v110_v46 = vmul.u32 73244475, %v102_v37  ;;  %vm885_vm2 = vcmp.ge.s32.totalorder %v130_v53, 9830  ;;  %vm889_vm3 = vcmp.ge.s32.totalorder %v131_v55, 9830  ;;  %v135_v24 = vand.u32 32767, %v895_v10 }
  0x2b   :  { %vm897_vm4 = vcmp.ge.s32.totalorder %v132_v60, 9830  ;;  %vm901_vm5 = vcmp.ge.s32.totalorder %v133_v61, 9830  ;;  %vm608_vm6 = vmpackc.low %vm889_vm3, %vm885_vm2  ;;  %v136_v30 = vand.u32 32767, %v905_v17  ;;  %v147_v47 = vshra.s32 %v875_v45, 15 }
  0x2c   :  { %v118_v56 = vshra.s32 %v110_v46, 16  ;;  %vm611_vm7 = vmpackc.low %vm901_vm5, %vm897_vm4  ;;  %vm143_vm9 = vcmp.ge.s32.totalorder %v135_v24, 9830  ;;  %v739_v52 = vmov 0.0   ;;  %vm740_vm2 = vmmov 0  }
  0x2d   :  { %vm144_vm10 = vcmp.ge.s32.totalorder %v136_v30, 9830  ;;  %v155_v51 = vand.u32 32767, %v147_v47  ;;  %684 = vmatprep.subr.bf16.mxu0 %v739_v52  ;;  %692 = vmatprep.mubr.msk.bf16.mxu0 %vm740_vm2, %v739_v52  ;;  %v148_v45 = vshra.s32 %v877_v48, 15  ;;  %v149_v57 = vshra.s32 %v879_v49, 15 }
  0x2e   :  { %v893_v9 = vxor.u32 %v118_v56, %v110_v46  ;;  %v146_v46 = vshra.s32 %v873_v43, 15 }
  0x2f   :  { %vm163_vm15 = vcmp.ge.s32.totalorder %v155_v51, 9830  ;;  %v156_v2 = vand.u32 32767, %v148_v45 }
  0x30   :  { %v134_v23 = vand.u32 32767, %v893_v9 }
  0x31   :  { %vm164_vm3 = vcmp.ge.s32.totalorder %v156_v2, 9830 }
  0x32   :  { %vm142_vm8 = vcmp.ge.s32.totalorder %v134_v23, 9830 }
  0x33   :  { %vm614_vm12 = vmpackc.low %vm143_vm9, %vm142_vm8 }
  0x82   :  { %v205_v35 = vpop.permute.xlu1 %204 }
  0x83   :  { %v195_v31 = vpop.permute.xlu0 %194 }
  0x86   :  { %v210_v50 = vpop.permute.xlu1 %209 }
  0x87   :  { %v200_v44 = vpop.permute.xlu0 %199 }
  0x8d   :  { %v215_v62 = vpop.permute.xlu0 %214  ;;  %v220_v6 = vpop.permute.xlu1 %219 }
  0x91   :  { %v225_v20 = vpop.permute.xlu0 %224  ;;  %v230_v27 = vpop.permute.xlu1 %229 }
  0x95   :  { %v374_v55 = vpop.permute.xlu1 %373 }
  0x99   :  { %v384_v43 = vpop.permute.xlu1 %383 }
  0x9d   :  { %v394_v5 = vpop.permute.xlu1 %393 }
  0xa1   :  { %v404_v23 = vpop.permute.xlu1 %403 }
  0xdf   :  { %v662_v54 = vpop.f32.mrb[0].mxu0 }
  0xe0   :  { %v308_v58 = vadd.f32 %v662_v54, %v205_v35  ;;  %v299_v59 = vpop.f32.mrb[1].mxu0  ;;  %v369_v54 = vpop.permute.xlu0 %368 }
  0xe1   :  { %v300_v63 = vadd.f32 %v299_v59, %v195_v31  ;;  %v663_v0 = vpop.f32.mrb[2].mxu0  ;;  %v137_v31 = vand.u32 32767, %v907_v18 }
  0xe2   :  { %v311_v3 = vadd.f32 %v663_v0, %v210_v50  ;;  %v302_v4 = vpop.f32.mrb[3].mxu0  ;;  %v332_v11 = vmax.f32 %v308_v58, 0.0  ;;  %v154_v50 = vand.u32 32767, %v146_v46 }
  0xe3   :  { %v303_v7 = vadd.f32 %v302_v4, %v200_v44  ;;  %v330_v15 = vmax.f32 %v300_v63, 0.0  ;;  %vm145_vm11 = vcmp.ge.s32.totalorder %v137_v31, 9830  ;;  %v709_v44 = vld [vmem:[%s994_s4 + $0x18] sm:$0xff]   ;;  %v150_v4 = vshra.s32 %v893_v9, 15 }
  0xe4   :  { %v333_v12 = vmax.f32 %v311_v3, 0.0  ;;  %vm617_vm13 = vmpackc.low %vm145_vm11, %vm144_vm10  ;;  %vm162_vm14 = vcmp.ge.s32.totalorder %v154_v50, 9830  ;;  %v379_v56 = vpop.permute.xlu0 %378  ;;  %v157_v3 = vand.u32 32767, %v149_v57  ;;  %v153_v9 = vshra.s32 %v907_v18, 15 }
  0xe5   :  { %v331_v16 = vmax.f32 %v303_v7, 0.0  ;;  %vm956_vm0 = vmpackc.low %vm163_vm15, %vm162_vm14  ;;  %v151_v7 = vshra.s32 %v895_v10, 15  ;;  %v158_v13 = vand.u32 32767, %v150_v4 }
  0xe6   :  { %v612_v19 = vpack.c.bf16 %v333_v12, %v332_v11  ;;  %vm165_vm4 = vcmp.ge.s32.totalorder %v157_v3, 9830  ;;  %v161_v18 = vand.u32 32767, %v153_v9 }
  0xe7   :  { %v666_v21 = vpop.f32.mrb[4].mxu0  ;;  %v609_v22 = vpack.c.bf16 %v331_v16, %v330_v15  ;;  %vm627_vm5 = vmpackc.low %vm165_vm4, %vm164_vm3 }
  0xe8   :  { %v324_v25 = vadd.f32 %v666_v21, %v225_v20  ;;  %v315_v26 = vpop.f32.mrb[5].mxu0  ;;  %v389_v61 = vpop.permute.xlu0 %388  ;;  %v152_v20 = vshra.s32 %v905_v17, 15  ;;  %vm169_vm10 = vcmp.ge.s32.totalorder %v161_v18, 9830 }
  0xe9   :  { %v316_v28 = vadd.f32 %v315_v26, %v215_v62  ;;  %v667_v29 = vpop.f32.mrb[6].mxu0  ;;  %668 = vmatprep.subr.msk.bf16.mxu1 %vm608_vm6, %v609_v22 }
  0xea   :  { %v327_v32 = vadd.f32 %v667_v29, %v230_v27  ;;  %v318_v33 = vpop.f32.mrb[7].mxu0  ;;  %669 = vmatpush3.bf16.msk.msra.mxu1 %vm608_vm6, %v609_v22  ;;  %v336_v35 = vmax.f32 %v324_v25, 0.0  ;;  %vm166_vm6 = vcmp.ge.s32.totalorder %v158_v13, 9830  ;;  %v160_v17 = vand.u32 32767, %v152_v20 }
  0xeb   :  { %v319_v34 = vadd.f32 %v318_v33, %v220_v6  ;;  %670 = vmatprep.subr.msk.bf16.mxu1 %vm611_vm7, %v612_v19  ;;  %v334_v37 = vmax.f32 %v316_v28, 0.0 }
  0xec   :  { %v337_v36 = vmax.f32 %v327_v32, 0.0  ;;  %v399_v14 = vpop.permute.xlu0 %398  ;;  %vm168_vm9 = vcmp.ge.s32.totalorder %v160_v17, 9830 }
  0xed   :  { %v335_v38 = vmax.f32 %v319_v34, 0.0  ;;  %vm633_vm11 = vmpackc.low %vm169_vm10, %vm168_vm9  ;;  %v520_v34 = vld [vmem:[%s996_s6] sm:$0x1]  ;;  %s714_s6 = scalar_lea.vmem %s589_s1, 32 }
  0xee   :  { %v618_v39 = vpack.c.bf16 %v337_v36, %v336_v35  ;;  %671 = vmatpush3.bf16.msk.msra.mxu1 %vm611_vm7, %v612_v19  ;;  %v159_v19 = vand.u32 32767, %v151_v7  ;;  %p715_p0 = scmp.ne.s32.totalorder %s589_s1, %s714_s6  ;;  %p720_p2 = scmp.lt.s32.totalorder %s714_s6, %s714_s6 }
  0xef   :  { %v615_v40 = vpack.c.bf16 %v335_v38, %v334_v37 }
  0xf0   :  { %vm167_vm7 = vcmp.ge.s32.totalorder %v159_v19, 9830  ;;  %v529_v35 = vpop.permute.xlu0 %528  ;;  %p721_p3 = por %p720_p2, %p719_p1 }
  0xf1   :  { %672 = vmatprep.subr.msk.bf16.mxu1 %vm614_vm12, %v615_v40  ;;  %vm630_vm8 = vmpackc.low %vm167_vm7, %vm166_vm6 }
  0xf2   :  { %673 = vmatpush3.bf16.msk.msra.mxu1 %vm614_vm12, %v615_v40  ;;  %vm580_vm12 = vcmask 58368   ;;  %p722_p4 = pnand %p721_p3, %p715_p0 }
  0xf3   :  { %674 = vmatprep.subr.msk.bf16.mxu1 %vm617_vm13, %v618_v39 }
  0xf6   :  { %675 = vmatpush3.bf16.msk.msra.mxu1 %vm617_vm13, %v618_v39 }
  0xf9   :  { %677 = vmatmul.mubr.msk.bf16.vlgmr.msra.gmra.mrb[0].mxu1 %vm426_vm1, %v707_v41 }
  0xfa   :  { %680 = vmatprep.mubr.msk.bf16.mxu1 %vm426_vm1, %v708_v42 }
 0x101   :  { %681 = vmatmul.mubr.msk.bf16.gmra.mrb[4].mxu1 %vm426_vm1, %v709_v44 }
 0x1cc   :  { %v678_v58 = vpop.f32.mrb[0].mxu1 }
 0x1cd   :  { %v482_v59 = vadd.f32 %v678_v58, %v379_v56  ;;  %v473_v60 = vpop.f32.mrb[1].mxu1 }
 0x1ce   :  { %v474_v62 = vadd.f32 %v473_v60, %v369_v54  ;;  %v679_v63 = vpop.f32.mrb[2].mxu1 }
 0x1cf   :  { %v485_v0 = vadd.f32 %v679_v63, %v384_v43  ;;  %v476_v1 = vpop.f32.mrb[3].mxu1  ;;  %v506_v8 = vmax.f32 %v482_v59, 0.0 }
 0x1d0   :  { %v477_v6 = vadd.f32 %v476_v1, %v374_v55  ;;  %v504_v11 = vmax.f32 %v474_v62, 0.0 }
 0x1d1   :  { %v507_v48 = vmax.f32 %v485_v0, 0.0 }
 0x1d2   :  { %v505_v49 = vmax.f32 %v477_v6, 0.0 }
 0x1d3   :  { %v628_v12 = vpack.c.bf16 %v507_v48, %v506_v8 }
 0x1d4   :  { %v625_v15 = vpack.c.bf16 %v505_v49, %v504_v11  ;;  %v682_v16 = vpop.f32.mrb[4].mxu1 }
 0x1d5   :  { %v498_v21 = vadd.f32 %v682_v16, %v399_v14  ;;  %v489_v22 = vpop.f32.mrb[5].mxu1 }
 0x1d6   :  { %v490_v10 = vadd.f32 %v489_v22, %v389_v61  ;;  %v683_v24 = vpop.f32.mrb[6].mxu1  ;;  %685 = vmatpush3.bf16.msk.msra.mxu0 %vm956_vm0, %v625_v15 }
 0x1d7   :  { %v501_v25 = vadd.f32 %v683_v24, %v404_v23  ;;  %v492_v26 = vpop.f32.mrb[7].mxu1  ;;  %686 = vmatprep.subr.bf16.mxu0 %v739_v52  ;;  %v510_v28 = vmax.f32 %v498_v21, 0.0 }
 0x1d8   :  { %v493_v27 = vadd.f32 %v492_v26, %v394_v5  ;;  %v508_v30 = vmax.f32 %v490_v10, 0.0 }
 0x1d9   :  { %v511_v29 = vmax.f32 %v501_v25, 0.0 }
 0x1da   :  { %v509_v31 = vmax.f32 %v493_v27, 0.0  ;;  %687 = vmatpush3.bf16.msk.msra.mxu0 %vm627_vm5, %v628_v12 }
 0x1db   :  { %v634_v32 = vpack.c.bf16 %v511_v29, %v510_v28  ;;  %688 = vmatprep.subr.bf16.mxu0 %v739_v52 }
 0x1dc   :  { %v631_v33 = vpack.c.bf16 %v509_v31, %v508_v30 }
 0x1de   :  { %689 = vmatpush3.bf16.msk.msra.mxu0 %vm630_vm8, %v631_v33 }
 0x1df   :  { %690 = vmatprep.subr.bf16.mxu0 %v739_v52 }
 0x1e2   :  { %691 = vmatpush3.bf16.msk.msra.mxu0 %vm633_vm11, %v634_v32 }
 0x1e5   :  { %693 = vmatmul.mubr.msk.bf16.vlgmr.msra.gmra.mrb[8].mxu0 %vm426_vm1, %v520_v34 }
 0x2b8   :  { %v568_v36 = vpop.f32.mrb[8].mxu0 }
 0x2b9   :  { %v569_v37 = vadd.f32 %v568_v36, %v529_v35  ;;  %v694_v38 = vpop.f32.mrb[9].mxu0 }
 0x2ba   :  { %v571_v39 = vpop.f32.mrb[10].mxu0 }
 0x2bb   :  { %v574_v40 = vsub.f32 0.0, %v569_v37  ;;  %v695_v41 = vpop.f32.mrb[11].mxu0 }
 0x2bd   :  { %v575_v42 = vmul.f32 1.442695, %v574_v40 }
 0x2bf   :  { %710 = vpow2.f32 %v575_v42 }
 0x2c9   :  { %v711_v44 = vpop.eup %710 }
 0x2ca   :  { %v577_v46 = vadd.f32 1.0, %v711_v44 }
 0x2cc   :  { %712 = vrcp.f32 %v577_v46 }
 0x2d6   :  { %v713_v47 = vpop.eup %712 }
 0x2d7   :  { %581 = vst.msk [vmem:[#allocation3] sm:$0x3] %vm580_vm12, %v713_v47 }
 0x2d8   :  { %725 = shalt.err (!%p722_p4)
}
 0x2d9   :  { %s726_s18 = scalar_lea.hbm %s998_s8, 32 }
 0x2da   :  { %p727_p5 = scmp.ne.s32.totalorder %s998_s8, %s726_s18  ;;  %p730_p6 = scmp.lt.u32.totalorder %s726_s18, %s998_s8 }
 0x2dc   :  { %p732_p7 = pnand %p730_p6, %p727_p5 }
 0x2de   :  { %735 = shalt.err (!%p732_p7)
}
 0x2df   :  { %591 = dma.vmem_to_hbm [thread:$0]  %s589_s1, 32, %s998_s8, [#allocation4]  }
 0x2e0   :  { %736 = dma.done.wait [#allocation4], 32  }
 0x2e1   :  { %737 = vsyncadd [#allocation4], 4294967264 }
 0x2e2   :  { %595 = vsyncpa [#allocation4], 1 }

</bundles_post_ra>
